<compile_context>
chip_gen: v6e
topology: v6e:2x2x1
jax: 0.10.0
libtpu: 0.0.40
codegen_flags: <defaults>
</compile_context>

<pallas_src>
import jax
import jax.numpy as jnp
from jax.experimental import pallas as pl
from jax.experimental.pallas import tpu as pltpu

N_SCALAR = 6          # location, level, grades, apply, ranking, ranking_absolu
S_PAD = 8             # scalar features padded to 8
D_BERT = 768          # pooled BERT output dim
IN_DIM = N_SCALAR + 2 * D_BERT    # 1542 (canonical fc1 fan-in)
H1 = 256
H2 = 64
H2_PAD = 128          # lane-full padding of H2
W3_ROWS = 8           # w3 padded to a full (8, 128) sublane tile
OUT = 1


def _mlp_kernel(xs_ref, xh_ref, xp_ref,
                w1s_ref, w1h_ref, w1p_ref, b1_ref,
                w2_ref, b2_ref, w3_ref, b3_ref, o_ref):
    # ---- fc1: three MXU-aligned bf16 partial products, f32 accumulation ----
    # Cast on the tile (no-op if the producer already handed us bf16); the
    # cast hides under the MXU instead of being a separate HBM-bound XLA op.
    xh = xh_ref[...].astype(jnp.bfloat16)
    xp = xp_ref[...].astype(jnp.bfloat16)
    h1 = jnp.dot(xh, w1h_ref[...], preferred_element_type=jnp.float32)
    h1 = h1 + jnp.dot(xp, w1p_ref[...], preferred_element_type=jnp.float32)
    h1 = h1 + jnp.dot(xs_ref[...], w1s_ref[...],
                      preferred_element_type=jnp.float32)
    h1 = jnp.maximum(h1 + b1_ref[...], 0.0)          # f32 bias + ReLU (VPU)

    # ---- fc2: bf16 MXU matmul, f32 accumulation ----
    h2 = jnp.dot(h1.astype(jnp.bfloat16), w2_ref[...],
                 preferred_element_type=jnp.float32)
    h2 = jnp.maximum(h2 + b2_ref[...], 0.0)          # f32 bias + ReLU (VPU)

    # ---- fc3: lane-dense epilogue ----
    # w3 (8, 128) [only row 0 / first 64 cols nonzero] contracted against
    # h2 (TB, 128) on their last dims -> (8, TB); row 0 is the logit laid out
    # along lanes, so the final store is an unmasked lane-full vst.
    logit = jax.lax.dot_general(
        w3_ref[...], h2.astype(jnp.bfloat16),
        dimension_numbers=(((1,), (1,)), ((), ())),
        preferred_element_type=jnp.float32)[0:1, :]           # (1, TB)
    prob = jax.nn.sigmoid(logit + b3_ref[...])                 # EUP
    o_ref[...] = prob.reshape(o_ref.shape)                     # (1, 1, TB)


def _round_up(x, m):
    return ((x + m - 1) // m) * m


def _pick_tb(B):
    """Batch tile: full-extent for tiny B, else a multiple of 16 giving
    >=2 grid steps (v7x megacore) and capped at 1024 (VMEM / DMA size)."""
    if B < 32:
        return B                           # block == full dim is always legal
    return min(1024, _round_up(pl.cdiv(B, 2), 16))


def _is_v5e():
    try:
        kind = jax.devices()[0].device_kind.lower()
    except Exception:
        return False
    return ("v5e" in kind) or ("v5 lite" in kind) or ("v5litepod" in kind)


def classification_mlp(x_s, x_h, x_p, kparams):
    """x_s: (B, 8) bf16, x_h/x_p: (B, 768) f32 or bf16 -> (B, 1) f32."""
    w1s, w1h, w1p, b1, w2, b2, w3, b3 = kparams
    B = x_h.shape[0]
    TB = _pick_tb(B)
    G = pl.cdiv(B, TB)

    def batch_spec(cols):
        return pl.BlockSpec((TB, cols), lambda i: (i, 0))

    def resident(shape):
        # Grid-invariant block index -> weights stay VMEM-resident across steps.
        return pl.BlockSpec(shape, lambda i: (0, 0))

    out = pl.pallas_call(
        _mlp_kernel,
        out_shape=jax.ShapeDtypeStruct((G, 1, TB), jnp.float32),
        grid=(G,),
        in_specs=[
            batch_spec(S_PAD),                 # x_s
            batch_spec(D_BERT),                # x_h
            batch_spec(D_BERT),                # x_p
            resident((S_PAD, H1)),             # w1s (bf16)
            resident((D_BERT, H1)),            # w1h (bf16)
            resident((D_BERT, H1)),            # w1p (bf16)
            resident((1, H1)),                 # b1  (f32)
            resident((H1, H2_PAD)),            # w2  (bf16, lane-padded)
            resident((1, H2_PAD)),             # b2  (f32, lane-padded)
            resident((W3_ROWS, H2_PAD)),       # w3  (bf16, row-0 only)
            resident((1, OUT)),                # b3  (f32)
        ],
        out_specs=pl.BlockSpec((1, 1, TB), lambda i: (i, 0, 0)),
        compiler_params=pltpu.CompilerParams(
            dimension_semantics=("parallel",),
            vmem_limit_bytes=32 * 1024 * 1024,
        ),
    )(x_s, x_h, x_p, w1s, w1h, w1p, b1, w2, b2, w3, b3)

    # lane-dense (G, 1, TB) -> API shape (B, 1); padded tail rows are dropped.
    return out.reshape(G * TB)[:B].reshape(B, OUT)


def pack_params(params):
    """Split / pad / cast the canonical (torch-layout) params for the kernel."""
    w1, b1, w2, b2, w3, b3 = params
    # fc1 rows follow the original concat order: 6 scalars, honour, project.
    w1_s = (jnp.zeros((S_PAD, H1), jnp.float32)
            .at[:N_SCALAR].set(w1[:N_SCALAR]).astype(jnp.bfloat16))
    w1_h = w1[N_SCALAR:N_SCALAR + D_BERT].astype(jnp.bfloat16)
    w1_p = w1[N_SCALAR + D_BERT:].astype(jnp.bfloat16)
    # fc2 padded 64 -> 128 lanes with zeros.
    w2_pad = (jnp.zeros((H1, H2_PAD), jnp.float32)
              .at[:, :H2].set(w2).astype(jnp.bfloat16))
    b2_pad = jnp.zeros((1, H2_PAD), jnp.float32).at[:, :H2].set(b2)
    # fc3 weight as a full (8, 128) sublane tile; only row 0 / cols [:64] used.
    w3_rows = (jnp.zeros((W3_ROWS, H2_PAD), jnp.float32)
               .at[0, :H2].set(w3[:, 0]).astype(jnp.bfloat16))
    return (w1_s, w1_h, w1_p, b1.astype(jnp.float32),
            w2_pad, b2_pad, w3_rows, b3.astype(jnp.float32))


def classification_forward(location, level, grades, apply_, ranking,
                           ranking_absolu, honour_pooled, project_pooled,
                           params):
    # Original module: torch.cat([...], dim=1).squeeze(-1) -> fc stack.  The
    # big concat is avoided: the 6 scalars are packed into a tiny zero-padded
    # (B, 8) bf16 block and the two pooled BERT vectors stay separate, each
    # multiplied by its own fc1 weight slice inside the kernel.
    B = location.shape[0]
    scalars = jnp.concatenate(
        [location, level, grades, apply_, ranking, ranking_absolu],
        axis=1)                                               # (B, 6, 1)
    x_s = jnp.zeros((B, S_PAD), jnp.bfloat16).at[:, :N_SCALAR].set(
        jnp.squeeze(scalars, axis=-1).astype(jnp.bfloat16))   # (B, 8)
    x_h = jnp.squeeze(honour_pooled, axis=-1)                 # (B, 768)
    x_p = jnp.squeeze(project_pooled, axis=-1)                # (B, 768)
    if x_h.dtype != jnp.bfloat16 and _is_v5e():
        # v5e is bandwidth-balanced: keep kernel input bytes at 2 B/elt there.
        x_h = x_h.astype(jnp.bfloat16)
        x_p = x_p.astype(jnp.bfloat16)
    return classification_mlp(x_s, x_h, x_p, pack_params(params))


def init_params(key):
    ks = jax.random.split(key, 6)

    def linear(kw, kb, fan_in, fan_out):
        bound = 1.0 / jnp.sqrt(fan_in)
        w = jax.random.uniform(kw, (fan_in, fan_out), jnp.float32, -bound, bound)
        b = jax.random.uniform(kb, (1, fan_out), jnp.float32, -bound, bound)
        return w, b

    w1, b1 = linear(ks[0], ks[1], IN_DIM, H1)
    w2, b2 = linear(ks[2], ks[3], H1, H2)
    w3, b3 = linear(ks[4], ks[5], H2, OUT)
    return (w1, b1, w2, b2, w3, b3)


if __name__ == "__main__":
    key = jax.random.PRNGKey(0)
    kp, *kin = jax.random.split(key, 10)
    params = init_params(kp)

    B = 2
    location       = jax.random.normal(kin[0], (B, 1, 1), jnp.float32)
    level          = jax.random.normal(kin[1], (B, 1, 1), jnp.float32)
    grades         = jax.random.normal(kin[2], (B, 1, 1), jnp.float32)
    apply_         = jax.random.normal(kin[3], (B, 1, 1), jnp.float32)
    ranking        = jax.random.normal(kin[4], (B, 1, 1), jnp.float32)
    ranking_absolu = jax.random.normal(kin[5], (B, 1, 1), jnp.float32)
    honour_pooled  = jax.random.normal(kin[6], (B, 768, 1), jnp.float32)
    project_pooled = jax.random.normal(kin[7], (B, 768, 1), jnp.float32)

    out = classification_forward(location, level, grades, apply_, ranking,
                                 ranking_absolu, honour_pooled, project_pooled,
                                 params)
    out = jax.block_until_ready(out)

    # sanity: shape (B, 1), values in (0, 1) from sigmoid
    assert out.shape == (B, OUT)
    assert bool(jnp.all((out > 0.0) & (out < 1.0)))

    # cross-check against pure-JAX f32 reference (bf16 MXU path -> looser tol)
    w1, b1, w2, b2, w3, b3 = params
    x_ref = jnp.squeeze(jnp.concatenate(
        [location, level, grades, apply_, ranking, ranking_absolu,
         honour_pooled, project_pooled], axis=1), axis=-1)
    h = jax.nn.relu(x_ref @ w1 + b1)
    h = jax.nn.relu(h @ w2 + b2)
    ref = jax.nn.sigmoid(h @ w3 + b3)
    assert bool(jnp.allclose(out, ref, atol=2e-2, rtol=2e-2))

    print("KERNEL_OK")
</pallas_src>

<mosaic_0001>
module attributes {stable_mosaic.version = 11 : i64} {
  func.func @_mlp_kernel(%arg0: i32, %arg1: memref<2x8xbf16, #tpu.memory_space<vmem>>, %arg2: memref<2x768xf32, #tpu.memory_space<vmem>>, %arg3: memref<2x768xf32, #tpu.memory_space<vmem>>, %arg4: memref<8x256xbf16, #tpu.memory_space<vmem>>, %arg5: memref<768x256xbf16, #tpu.memory_space<vmem>>, %arg6: memref<768x256xbf16, #tpu.memory_space<vmem>>, %arg7: memref<1x256xf32, #tpu.memory_space<vmem>>, %arg8: memref<256x128xbf16, #tpu.memory_space<vmem>>, %arg9: memref<1x128xf32, #tpu.memory_space<vmem>>, %arg10: memref<8x128xbf16, #tpu.memory_space<vmem>>, %arg11: memref<1x1xf32, #tpu.memory_space<vmem>>, %arg12: memref<1x1x2xf32, #tpu.memory_space<vmem>>) attributes {dimension_semantics = [#tpu.dimension_semantics<parallel>], iteration_bounds = array<i64: 1>, scalar_prefetch = 0 : i64, scratch_operands = 0 : i64, tpu.core_type = #tpu.core_type<tc>, window_params = [{transform_indices = @transform_0, window_bounds = array<i64: 2, 8>}, {transform_indices = @transform_1, window_bounds = array<i64: 2, 768>}, {transform_indices = @transform_2, window_bounds = array<i64: 2, 768>}, {pipeline_mode = #tpu.pipeline_mode<synchronous>, transform_indices = @transform_3, window_bounds = array<i64: 8, 256>}, {pipeline_mode = #tpu.pipeline_mode<synchronous>, transform_indices = @transform_4, window_bounds = array<i64: 768, 256>}, {pipeline_mode = #tpu.pipeline_mode<synchronous>, transform_indices = @transform_5, window_bounds = array<i64: 768, 256>}, {pipeline_mode = #tpu.pipeline_mode<synchronous>, transform_indices = @transform_6, window_bounds = array<i64: 1, 256>}, {pipeline_mode = #tpu.pipeline_mode<synchronous>, transform_indices = @transform_7, window_bounds = array<i64: 256, 128>}, {pipeline_mode = #tpu.pipeline_mode<synchronous>, transform_indices = @transform_8, window_bounds = array<i64: 1, 128>}, {pipeline_mode = #tpu.pipeline_mode<synchronous>, transform_indices = @transform_9, window_bounds = array<i64: 8, 128>}, {pipeline_mode = #tpu.pipeline_mode<synchronous>, transform_indices = @transform_10, window_bounds = array<i64: 1, 1>}, {transform_indices = @transform_11, window_bounds = array<i64: 1, 1, 2>}]} {
    %c0 = arith.constant 0 : index
    %c0_0 = arith.constant 0 : index
    %0 = vector.load %arg2[%c0, %c0_0] : memref<2x768xf32, #tpu.memory_space<vmem>>, vector<2x768xf32>
    %1 = arith.truncf %0 : vector<2x768xf32> to vector<2x768xbf16>
    %c0_1 = arith.constant 0 : index
    %c0_2 = arith.constant 0 : index
    %2 = vector.load %arg3[%c0_1, %c0_2] : memref<2x768xf32, #tpu.memory_space<vmem>>, vector<2x768xf32>
    %3 = arith.truncf %2 : vector<2x768xf32> to vector<2x768xbf16>
    %c0_3 = arith.constant 0 : index
    %c0_4 = arith.constant 0 : index
    %4 = vector.load %arg5[%c0_3, %c0_4] : memref<768x256xbf16, #tpu.memory_space<vmem>>, vector<768x256xbf16>
    %cst = arith.constant dense<0.000000e+00> : vector<2x256xf32>
    %5 = tpu.matmul %1, %4, %cst {dimension_numbers = #tpu.dot_dimension_numbers<[1], [0], [0], [1], [0, 0, 1, 1], [], []>} : vector<2x768xbf16>, vector<768x256xbf16>, vector<2x256xf32> -> vector<2x256xf32>
    %c0_5 = arith.constant 0 : index
    %c0_6 = arith.constant 0 : index
    %6 = vector.load %arg6[%c0_5, %c0_6] : memref<768x256xbf16, #tpu.memory_space<vmem>>, vector<768x256xbf16>
    %cst_7 = arith.constant dense<0.000000e+00> : vector<2x256xf32>
    %7 = tpu.matmul %3, %6, %cst_7 {dimension_numbers = #tpu.dot_dimension_numbers<[1], [0], [0], [1], [0, 0, 1, 1], [], []>} : vector<2x768xbf16>, vector<768x256xbf16>, vector<2x256xf32> -> vector<2x256xf32>
    %8 = arith.addf %5, %7 : vector<2x256xf32>
    %c0_8 = arith.constant 0 : index
    %c0_9 = arith.constant 0 : index
    %9 = vector.load %arg1[%c0_8, %c0_9] : memref<2x8xbf16, #tpu.memory_space<vmem>>, vector<2x8xbf16>
    %c0_10 = arith.constant 0 : index
    %c0_11 = arith.constant 0 : index
    %10 = vector.load %arg4[%c0_10, %c0_11] : memref<8x256xbf16, #tpu.memory_space<vmem>>, vector<8x256xbf16>
    %cst_12 = arith.constant dense<0.000000e+00> : vector<2x256xf32>
    %11 = tpu.matmul %9, %10, %cst_12 {dimension_numbers = #tpu.dot_dimension_numbers<[1], [0], [0], [1], [0, 0, 1, 1], [], []>} : vector<2x8xbf16>, vector<8x256xbf16>, vector<2x256xf32> -> vector<2x256xf32>
    %12 = arith.addf %8, %11 : vector<2x256xf32>
    %c0_13 = arith.constant 0 : index
    %c0_14 = arith.constant 0 : index
    %13 = vector.load %arg7[%c0_13, %c0_14] : memref<1x256xf32, #tpu.memory_space<vmem>>, vector<1x256xf32>
    %14 = vector.broadcast %13 : vector<1x256xf32> to vector<2x256xf32>
    %15 = arith.addf %12, %14 : vector<2x256xf32>
    %cst_15 = arith.constant 0.000000e+00 : f32
    %16 = vector.broadcast %cst_15 : f32 to vector<2x256xf32>
    %17 = arith.maximumf %15, %16 : vector<2x256xf32>
    %18 = arith.truncf %17 : vector<2x256xf32> to vector<2x256xbf16>
    %c0_16 = arith.constant 0 : index
    %c0_17 = arith.constant 0 : index
    %19 = vector.load %arg8[%c0_16, %c0_17] : memref<256x128xbf16, #tpu.memory_space<vmem>>, vector<256x128xbf16>
    %cst_18 = arith.constant dense<0.000000e+00> : vector<2x128xf32>
    %20 = tpu.matmul %18, %19, %cst_18 {dimension_numbers = #tpu.dot_dimension_numbers<[1], [0], [0], [1], [0, 0, 1, 1], [], []>} : vector<2x256xbf16>, vector<256x128xbf16>, vector<2x128xf32> -> vector<2x128xf32>
    %c0_19 = arith.constant 0 : index
    %c0_20 = arith.constant 0 : index
    %21 = vector.load %arg9[%c0_19, %c0_20] : memref<1x128xf32, #tpu.memory_space<vmem>>, vector<1x128xf32>
    %22 = vector.broadcast %21 : vector<1x128xf32> to vector<2x128xf32>
    %23 = arith.addf %20, %22 : vector<2x128xf32>
    %cst_21 = arith.constant 0.000000e+00 : f32
    %24 = vector.broadcast %cst_21 : f32 to vector<2x128xf32>
    %25 = arith.maximumf %23, %24 : vector<2x128xf32>
    %c0_22 = arith.constant 0 : index
    %c0_23 = arith.constant 0 : index
    %26 = vector.load %arg10[%c0_22, %c0_23] : memref<8x128xbf16, #tpu.memory_space<vmem>>, vector<8x128xbf16>
    %27 = arith.truncf %25 : vector<2x128xf32> to vector<2x128xbf16>
    %cst_24 = arith.constant dense<0.000000e+00> : vector<8x2xf32>
    %28 = tpu.matmul %26, %27, %cst_24 {dimension_numbers = #tpu.dot_dimension_numbers<[1], [1], [0], [0], [0, 0, 1, 0], [], []>} : vector<8x128xbf16>, vector<2x128xbf16>, vector<8x2xf32> -> vector<8x2xf32>
    %29 = vector.extract_strided_slice %28 {offsets = [0, 0], sizes = [1, 2], strides = [1, 1]} : vector<8x2xf32> to vector<1x2xf32>
    %c0_25 = arith.constant 0 : index
    %c0_26 = arith.constant 0 : index
    %30 = vector.load %arg11[%c0_25, %c0_26] : memref<1x1xf32, #tpu.memory_space<vmem>>, vector<1x1xf32>
    %31 = vector.broadcast %30 : vector<1x1xf32> to vector<1x2xf32>
    %32 = arith.addf %29, %31 : vector<1x2xf32>
    %33 = arith.negf %32 : vector<1x2xf32>
    %34 = math.exp %33 : vector<1x2xf32>
    %cst_27 = arith.constant 1.000000e+00 : f32
    %35 = vector.broadcast %cst_27 : f32 to vector<1x2xf32>
    %36 = arith.addf %35, %34 : vector<1x2xf32>
    %37 = arith.divf %35, %36 : vector<1x2xf32>
    %38 = vector.shape_cast %37 : vector<1x2xf32> to vector<1x1x2xf32>
    %c0_28 = arith.constant 0 : index
    %c0_29 = arith.constant 0 : index
    %c0_30 = arith.constant 0 : index
    %39 = vector.load %arg12[%c0_28, %c0_29, %c0_30] : memref<1x1x2xf32, #tpu.memory_space<vmem>>, vector<1x1x2xf32>
    tpu.vector_store %arg12[%c0_28, %c0_29, %c0_30], %38 {strides = array<i32>} : memref<1x1x2xf32, #tpu.memory_space<vmem>>, vector<1x1x2xf32>,
    return
  }
  func.func @transform_0(%arg0: i32) -> (i32, i32) {
    %c0_i32 = arith.constant 0 : i32
    %c0_i32_0 = arith.constant 0 : i32
    return %arg0, %c0_i32 : i32, i32
  }
  func.func @transform_1(%arg0: i32) -> (i32, i32) {
    %c0_i32 = arith.constant 0 : i32
    %c0_i32_0 = arith.constant 0 : i32
    return %arg0, %c0_i32 : i32, i32
  }
  func.func @transform_2(%arg0: i32) -> (i32, i32) {
    %c0_i32 = arith.constant 0 : i32
    %c0_i32_0 = arith.constant 0 : i32
    return %arg0, %c0_i32 : i32, i32
  }
  func.func @transform_3(%arg0: i32) -> (i32, i32) {
    %c0_i32 = arith.constant 0 : i32
    %c0_i32_0 = arith.constant 0 : i32
    %c0_i32_1 = arith.constant 0 : i32
    return %c0_i32, %c0_i32_0 : i32, i32
  }
  func.func @transform_4(%arg0: i32) -> (i32, i32) {
    %c0_i32 = arith.constant 0 : i32
    %c0_i32_0 = arith.constant 0 : i32
    %c0_i32_1 = arith.constant 0 : i32
    return %c0_i32, %c0_i32_0 : i32, i32
  }
  func.func @transform_5(%arg0: i32) -> (i32, i32) {
    %c0_i32 = arith.constant 0 : i32
    %c0_i32_0 = arith.constant 0 : i32
    %c0_i32_1 = arith.constant 0 : i32
    return %c0_i32, %c0_i32_0 : i32, i32
  }
  func.func @transform_6(%arg0: i32) -> (i32, i32) {
    %c0_i32 = arith.constant 0 : i32
    %c0_i32_0 = arith.constant 0 : i32
    %c0_i32_1 = arith.constant 0 : i32
    return %c0_i32, %c0_i32_0 : i32, i32
  }
  func.func @transform_7(%arg0: i32) -> (i32, i32) {
    %c0_i32 = arith.constant 0 : i32
    %c0_i32_0 = arith.constant 0 : i32
    %c0_i32_1 = arith.constant 0 : i32
    return %c0_i32, %c0_i32_0 : i32, i32
  }
  func.func @transform_8(%arg0: i32) -> (i32, i32) {
    %c0_i32 = arith.constant 0 : i32
    %c0_i32_0 = arith.constant 0 : i32
    %c0_i32_1 = arith.constant 0 : i32
    return %c0_i32, %c0_i32_0 : i32, i32
  }
  func.func @transform_9(%arg0: i32) -> (i32, i32) {
    %c0_i32 = arith.constant 0 : i32
    %c0_i32_0 = arith.constant 0 : i32
    %c0_i32_1 = arith.constant 0 : i32
    return %c0_i32, %c0_i32_0 : i32, i32
  }
  func.func @transform_10(%arg0: i32) -> (i32, i32) {
    %c0_i32 = arith.constant 0 : i32
    %c0_i32_0 = arith.constant 0 : i32
    %c0_i32_1 = arith.constant 0 : i32
    return %c0_i32, %c0_i32_0 : i32, i32
  }
  func.func @transform_11(%arg0: i32) -> (i32, i32, i32) {
    %c0_i32 = arith.constant 0 : i32
    %c0_i32_0 = arith.constant 0 : i32
    %c0_i32_1 = arith.constant 0 : i32
    return %arg0, %c0_i32, %c0_i32_0 : i32, i32, i32
  }
}

</mosaic_0001>

<bundles_post_ra>
// kernel: tpu_custom_call.1
= control target key start
LH: loop header
LB: loop body
LE: loop exit
PB: predicated region body
PF: predicated region fallthrough
CT: control target
= control target key end

     0   :  { %s2815_s0 = inlined_call_operand.vmem [shape: bf16[2,8], index: 0, kind: input, shape index: {}]   ;;  %s2816_s1 = inlined_call_operand.hbm [shape: f32[2,768], index: 1, kind: input, shape index: {}]   ;;  %s2817_s2 = inlined_call_operand.hbm [shape: f32[2,768], index: 2, kind: input, shape index: {}]   ;;  %s2818_s3 = inlined_call_operand.hbm [shape: bf16[8,256], index: 3, kind: input, shape index: {}]   ;;  %s2819_s4 = inlined_call_operand.hbm [shape: bf16[768,256], index: 4, kind: input, shape index: {}]   ;;  %s2820_s5 = inlined_call_operand.hbm [shape: bf16[768,256], index: 5, kind: input, shape index: {}]   ;;  %s2821_s6 = inlined_call_operand.vmem [shape: f32[1,256], index: 6, kind: input, shape index: {}]   ;;  %s2822_s7 = inlined_call_operand.hbm [shape: bf16[256,128], index: 7, kind: input, shape index: {}]   ;;  %s2823_s8 = inlined_call_operand.vmem [shape: f32[1,128], index: 8, kind: input, shape index: {}]   ;;  %s2824_s9 = inlined_call_operand.vmem [shape: bf16[8,128], index: 9, kind: input, shape index: {}]   ;;  %s2825_s10 = inlined_call_operand.<no memory space> [shape: f32[1,1], index: 10, kind: input, shape index: {}]   ;;  %s2826_s11 = inlined_call_operand.hbm [shape: f32[1,1,2], index: 11, kind: output, shape index: {}]  }
   0x1   :  { %v16_v0 = vstv %s2825_s10 }
   0x2   :  { %17 = vst [vmem:[#allocation2] sm:$0x1] %v16_v0 }
   0x3   :  { %18 = vsyncpa [#allocation4], 0 }
   0x4   :  { %19 = vsyncpa [#allocation7], 0 }
   0x5   :  { %20 = vsyncpa [#allocation10], 0 }
   0x6   :  { %21 = vsyncpa [#allocation13], 0 }
   0x7   :  { %22 = vsyncpa [#allocation5], 0  ;;  %s2656_s19 = smov [#allocation6]   ;;  %s2657_s21 = smov [#allocation9]  }
   0x8   :  { %s41_s20 = sshll.u32 %s2656_s19, 4  ;;  %s60_s22 = sshll.u32 %s2657_s21, 4  ;;  %s42_s20 = int_to_ptr.vmem [resolvable:$true] %s41_s20  ;;  %s61_s22 = int_to_ptr.vmem [resolvable:$true] %s60_s22 }
   0x9   :  { %s2514_s23 = scalar_lea.vmem %s42_s20, 192  ;;  %p2519_p1 = scmp.lt.s32.totalorder %s42_s20, %s42_s20 }
   0xa   :  { %p2515_p0 = scmp.ne.s32.totalorder %s42_s20, %s2514_s23  ;;  %p2520_p2 = scmp.lt.s32.totalorder %s2514_s23, %s2514_s23 }
   0xc   :  { %p2521_p3 = por %p2520_p2, %p2519_p1 }
   0xe   :  { %p2522_p4 = pnand %p2521_p3, %p2515_p0 }
  0x10   :  { %2525 = shalt.err (!%p2522_p4)
}
  0x11   :  { %44 = dma.hbm_to_vmem [thread:$0]  %s2817_s2, 192, %s42_s20, [#allocation7]  }
  0x12   :  { %s2534_s25 = scalar_lea.vmem %s61_s22, 12288  ;;  %p2539_p6 = scmp.lt.s32.totalorder %s61_s22, %s61_s22 }
  0x13   :  { %p2535_p5 = scmp.ne.s32.totalorder %s61_s22, %s2534_s25  ;;  %p2540_p7 = scmp.lt.s32.totalorder %s2534_s25, %s2534_s25 }
  0x15   :  { %p2541_p8 = por %p2540_p7, %p2539_p6 }
  0x17   :  { %p2542_p9 = pnand %p2541_p8, %p2535_p5 }
  0x19   :  { %2545 = shalt.err (!%p2542_p9)
}
  0x1a   :  { %s2658_s26 = smov 128   ;;  %s2659_s27 = smov 8  }
  0x1b   :  { %66 = dma.hbm_to_vmem [thread:$0]  %s2819_s4, 12288, %s61_s22, [#allocation10], %s2658_s26, %s2658_s26, %s2659_s27  }
  0x1c   :  { %s2660_s30 = smov [#allocation3]   ;;  %s2661_s13 = smov [#allocation8]  }
  0x1d   :  { %s31_s12 = sshll.u32 %s2660_s30, 4  ;;  %s51_s2 = sshll.u32 %s2661_s13, 4  ;;  %s32_s12 = int_to_ptr.vmem [resolvable:$true] %s31_s12  ;;  %s52_s2 = int_to_ptr.vmem [resolvable:$true] %s51_s2 }
  0x1e   :  { %s2554_s14 = scalar_lea.vmem %s32_s12, 192  ;;  %p2559_p11 = scmp.lt.s32.totalorder %s32_s12, %s32_s12 }
  0x1f   :  { %p2555_p10 = scmp.ne.s32.totalorder %s32_s12, %s2554_s14  ;;  %p2560_p12 = scmp.lt.s32.totalorder %s2554_s14, %s2554_s14 }
  0x21   :  { %p2561_p13 = por %p2560_p12, %p2559_p11 }
  0x23   :  { %p2562_p0 = pnand %p2561_p13, %p2555_p10 }
  0x25   :  { %2565 = shalt.err (!%p2562_p0)
}
  0x26   :  { %34 = dma.hbm_to_vmem [thread:$0]  %s2816_s1, 192, %s32_s12, [#allocation4]  }
  0x27   :  { %s2574_s17 = scalar_lea.vmem %s52_s2, 128  ;;  %p2579_p2 = scmp.lt.s32.totalorder %s52_s2, %s52_s2 }
  0x28   :  { %p2575_p1 = scmp.ne.s32.totalorder %s52_s2, %s2574_s17  ;;  %p2580_p3 = scmp.lt.s32.totalorder %s2574_s17, %s2574_s17 }
  0x2a   :  { %p2581_p4 = por %p2580_p3, %p2579_p2 }
  0x2c   :  { %p2582_p5 = pnand %p2581_p4, %p2575_p1 }
  0x2e   :  { %2585 = shalt.err (!%p2582_p5)
}
  0x2f   :  { %54 = dma.hbm_to_vmem [thread:$0]  %s2818_s3, 128, %s52_s2, [#allocation7]  }
  0x30   :  { %s2662_s19 = smov [#allocation11]   ;;  %s2663_s21 = smov [#allocation12]  }
  0x31   :  { %s72_s20 = sshll.u32 %s2662_s19, 4  ;;  %s86_s22 = sshll.u32 %s2663_s21, 4  ;;  %s73_s20 = int_to_ptr.vmem [resolvable:$true] %s72_s20  ;;  %s87_s22 = int_to_ptr.vmem [resolvable:$true] %s86_s22 }
  0x32   :  { %s2594_s23 = scalar_lea.vmem %s73_s20, 12288  ;;  %p2599_p7 = scmp.lt.s32.totalorder %s73_s20, %s73_s20 }
  0x33   :  { %p2595_p6 = scmp.ne.s32.totalorder %s73_s20, %s2594_s23  ;;  %p2600_p8 = scmp.lt.s32.totalorder %s2594_s23, %s2594_s23 }
  0x35   :  { %p2601_p9 = por %p2600_p8, %p2599_p7 }
  0x37   :  { %p2602_p10 = pnand %p2601_p9, %p2595_p6 }
  0x39   :  { %2605 = shalt.err (!%p2602_p10)
}
  0x3a   :  { %78 = dma.hbm_to_vmem [thread:$0]  %s2820_s5, 12288, %s73_s20, [#allocation10], %s2658_s26, %s2658_s26, %s2659_s27  }
  0x3b   :  { %s2614_s3 = scalar_lea.vmem %s87_s22, 2048  ;;  %p2619_p12 = scmp.lt.s32.totalorder %s87_s22, %s87_s22 }
  0x3c   :  { %p2615_p11 = scmp.ne.s32.totalorder %s87_s22, %s2614_s3  ;;  %p2620_p13 = scmp.lt.s32.totalorder %s2614_s3, %s2614_s3 }
  0x3e   :  { %p2621_p0 = por %p2620_p13, %p2619_p12 }
  0x40   :  { %p2622_p1 = pnand %p2621_p0, %p2615_p11 }
  0x42   :  { %2625 = shalt.err (!%p2622_p1)
}
  0x43   :  { %s2664_s24 = smov 64   ;;  %s2665_s25 = smov 4  }
  0x44   :  { %92 = dma.hbm_to_vmem [thread:$0]  %s2822_s7, 2048, %s87_s22, [#allocation13], %s2664_s24, %s2664_s24, %s2665_s25  }
  0x45   :  { %2646 = dma.done.wait [#allocation4], 192  }
  0x46   :  { %2647 = vsyncadd [#allocation4], 4294967104 }
  0x47   :  { %2648 = dma.done.wait [#allocation7], 320  }
  0x48   :  { %2649 = vsyncadd [#allocation7], 4294966976 }
  0x49   :  { %2650 = dma.done.wait [#allocation10], 24576  }
  0x4a   :  { %2651 = vsyncadd [#allocation10], 4294942720 }
  0x4b   :  { %2652 = dma.done.wait [#allocation13], 2048  }
  0x4c   :  { %2653 = vsyncadd [#allocation13], 4294965248  ;;  %v2194_v1 = vld [vmem:[#allocation11 + $0x74] ss:$8 sps:$4 sm:$0xff]   ;;  %v2198_v3 = vld [vmem:[#allocation11 + $0x70] ss:$8 sps:$4 sm:$0xff]   ;;  %v126_v39 = vlaneseq }
  0x4d   :  { %v2196_v2 = vld [vmem:[#allocation11 + $0x174] ss:$8 sps:$4 sm:$0xff]   ;;  %872 = vmatprep.subr.bf16.mxu0 %v2194_v1  ;;  %v2199_v4 = vld [vmem:[#allocation11 + $0x170] ss:$8 sps:$4 sm:$0xff]   ;;  %v2200_v5 = vld [vmem:[#allocation11 + $0x64] ss:$8 sps:$4 sm:$0xff]  }
  0x4e   :  { %913 = vmatprep.subr.bf16.mxu1 %v2196_v2  ;;  %873 = vmatpush1.bf16.msra.mxu0 %v2198_v3  ;;  %v2202_v6 = vld [vmem:[#allocation11 + $0x164] ss:$8 sps:$4 sm:$0xff]   ;;  %v2204_v7 = vld [vmem:[#allocation11 + $0x60] ss:$8 sps:$4 sm:$0xff]   ;;  %v2206_v9 = vld [vmem:[#allocation11 + $0x54] ss:$8 sps:$4 sm:$0xff]  }
  0x4f   :  { %914 = vmatpush1.bf16.msra.mxu1 %v2199_v4  ;;  %874 = vmatprep.subr.bf16.mxu0 %v2200_v5  ;;  %v2205_v8 = vld [vmem:[#allocation11 + $0x160] ss:$8 sps:$4 sm:$0xff]   ;;  %v2208_v10 = vld [vmem:[#allocation11 + $0x154] ss:$8 sps:$4 sm:$0xff]   ;;  %v2210_v11 = vld [vmem:[#allocation11 + $0x50] ss:$8 sps:$4 sm:$0xff]  }
  0x50   :  { %915 = vmatprep.subr.bf16.mxu1 %v2202_v6  ;;  %v2211_v12 = vld [vmem:[#allocation11 + $0x150] ss:$8 sps:$4 sm:$0xff]   ;;  %v2212_v13 = vld [vmem:[#allocation11 + $0x44] ss:$8 sps:$4 sm:$0xff]   ;;  %v2216_v15 = vld [vmem:[#allocation11 + $0x40] ss:$8 sps:$4 sm:$0xff]  }
  0x51   :  { %v2214_v14 = vld [vmem:[#allocation11 + $0x144] ss:$8 sps:$4 sm:$0xff]   ;;  %v2217_v16 = vld [vmem:[#allocation11 + $0x140] ss:$8 sps:$4 sm:$0xff]   ;;  %v2218_v17 = vld [vmem:[#allocation11 + $0x34] ss:$8 sps:$4 sm:$0xff]  }
  0x52   :  { %875 = vmatpush1.bf16.msra.mxu0 %v2204_v7  ;;  %v2220_v18 = vld [vmem:[#allocation11 + $0x134] ss:$8 sps:$4 sm:$0xff]   ;;  %v2222_v19 = vld [vmem:[#allocation11 + $0x30] ss:$8 sps:$4 sm:$0xff]   ;;  %v2224_v21 = vld [vmem:[#allocation11 + $0x24] ss:$8 sps:$4 sm:$0xff]  }
  0x53   :  { %916 = vmatpush1.bf16.msra.mxu1 %v2205_v8  ;;  %876 = vmatprep.subr.bf16.mxu0 %v2206_v9  ;;  %v2223_v20 = vld [vmem:[#allocation11 + $0x130] ss:$8 sps:$4 sm:$0xff]   ;;  %v2226_v22 = vld [vmem:[#allocation11 + $0x124] ss:$8 sps:$4 sm:$0xff]   ;;  %v2228_v23 = vld [vmem:[#allocation11 + $0x20] ss:$8 sps:$4 sm:$0xff]  }
  0x54   :  { %917 = vmatprep.subr.bf16.mxu1 %v2208_v10  ;;  %v2229_v24 = vld [vmem:[#allocation11 + $0x120] ss:$8 sps:$4 sm:$0xff]   ;;  %v2230_v25 = vld [vmem:[#allocation11 + $0x14] ss:$8 sps:$4 sm:$0xff]   ;;  %v2234_v27 = vld [vmem:[#allocation11 + $0x10] ss:$8 sps:$4 sm:$0xff]  }
  0x55   :  { %v2232_v26 = vld [vmem:[#allocation11 + $0x114] ss:$8 sps:$4 sm:$0xff]   ;;  %v2235_v28 = vld [vmem:[#allocation11 + $0x110] ss:$8 sps:$4 sm:$0xff]   ;;  %v2236_v29 = vld [vmem:[#allocation11 + $0x4] ss:$8 sps:$4 sm:$0xff]  }
  0x56   :  { %877 = vmatpush1.bf16.msra.mxu0 %v2210_v11  ;;  %v2238_v30 = vld [vmem:[#allocation11 + $0x104] ss:$8 sps:$4 sm:$0xff]   ;;  %v2240_v31 = vld [vmem:[#allocation11] ss:$8 sps:$4 sm:$0xff]   ;;  %v2242_v33 = vld [vmem:[#allocation11 + $0xf4] ss:$8 sps:$4 sm:$0xff]  }
  0x57   :  { %918 = vmatpush1.bf16.msra.mxu1 %v2211_v12  ;;  %878 = vmatprep.subr.bf16.mxu0 %v2212_v13  ;;  %v2241_v32 = vld [vmem:[#allocation11 + $0x100] ss:$8 sps:$4 sm:$0xff]   ;;  %v2244_v34 = vld [vmem:[#allocation11 + $0x1f4] ss:$8 sps:$4 sm:$0xff]   ;;  %v2246_v35 = vld [vmem:[#allocation11 + $0xf0] ss:$8 sps:$4 sm:$0xff]  }
  0x58   :  { %919 = vmatprep.subr.bf16.mxu1 %v2214_v14  ;;  %v2247_v36 = vld [vmem:[#allocation11 + $0x1f0] ss:$8 sps:$4 sm:$0xff]   ;;  %v2666_v37 = vmov 1983009808   ;;  %v2248_v40 = vld [vmem:[#allocation11 + $0xe4] ss:$8 sps:$4 sm:$0xff]  }
  0x59   :  { %v124_v38 = vunpack.c.l.s4 %v2666_v37  ;;  %v2250_v41 = vld [vmem:[#allocation11 + $0x1e4] ss:$8 sps:$4 sm:$0xff]   ;;  %v2252_v42 = vld [vmem:[#allocation11 + $0xe0] ss:$8 sps:$4 sm:$0xff]   ;;  %v2758_v44 = vshrl.u32 %v126_v39, 7  ;;  %vm1609_vm0 = vcmask 1043456  }
  0x5a   :  { %879 = vmatpush1.bf16.msra.mxu0 %v2216_v15  ;;  %v2253_v45 = vld [vmem:[#allocation11 + $0x1e0] ss:$8 sps:$4 sm:$0xff]   ;;  %v2254_v46 = vld [vmem:[#allocation11 + $0xd4] ss:$8 sps:$4 sm:$0xff]   ;;  %v2258_v48 = vld [vmem:[#allocation11 + $0xd0] ss:$8 sps:$4 sm:$0xff]  }
  0x5b   :  { %920 = vmatpush1.bf16.msra.mxu1 %v2217_v16  ;;  %880 = vmatprep.subr.bf16.mxu0 %v2218_v17  ;;  %v125_v43 = vunpack.c.0.s8 %v124_v38  ;;  %v2256_v47 = vld [vmem:[#allocation11 + $0x1d4] ss:$8 sps:$4 sm:$0xff]   ;;  %v2259_v49 = vld [vmem:[#allocation11 + $0x1d0] ss:$8 sps:$4 sm:$0xff]   ;;  %v2260_v51 = vld [vmem:[#allocation11 + $0xc4] ss:$8 sps:$4 sm:$0xff]  }
  0x5c   :  { %921 = vmatprep.subr.bf16.mxu1 %v2220_v18  ;;  %v2262_v52 = vld [vmem:[#allocation11 + $0x1c4] ss:$8 sps:$4 sm:$0xff]   ;;  %v2264_v54 = vld [vmem:[#allocation11 + $0xc0] ss:$8 sps:$4 sm:$0xff]   ;;  %v2266_v58 = vld [vmem:[#allocation11 + $0xb4] ss:$8 sps:$4 sm:$0xff]  }
  0x5d   :  { %v2761_v50 = vsub.s32 %v125_v43, %v2758_v44  ;;  %v159_v53 = vld [vmem:[#allocation6] sm:$0xff]  ;;  %v2265_v57 = vld [vmem:[#allocation11 + $0x1c0] ss:$8 sps:$4 sm:$0xff]   ;;  %v2268_v59 = vld [vmem:[#allocation11 + $0x1b4] ss:$8 sps:$4 sm:$0xff]   ;;  %vm1605_vm1 = vcmask 64512  }
  0x5e   :  { %881 = vmatpush1.bf16.msra.mxu0 %v2222_v19  ;;  %v163_v56 = vcombine.high %v159_v53, %v159_v53  ;;  %v2270_v62 = vld [vmem:[#allocation11 + $0xb0] ss:$8 sps:$4 sm:$0xff]   ;;  %v2272_v2 = vld [vmem:[#allocation11 + $0xa4] ss:$8 sps:$4 sm:$0xff]   ;;  %v2276_v5 = vld [vmem:[#allocation11 + $0xa0] ss:$8 sps:$4 sm:$0xff]  }
  0x5f   :  { %922 = vmatpush1.bf16.msra.mxu1 %v2223_v20  ;;  %882 = vmatprep.subr.bf16.mxu0 %v2224_v21  ;;  %v170_v55 = vrot.slane %v159_v53, %v2761_v50  ;;  %v2271_v1 = vld [vmem:[#allocation11 + $0x1b0] ss:$8 sps:$4 sm:$0xff]   ;;  %v2274_v3 = vld [vmem:[#allocation11 + $0x1a4] ss:$8 sps:$4 sm:$0xff]   ;;  %v2277_v6 = vld [vmem:[#allocation11 + $0x1a0] ss:$8 sps:$4 sm:$0xff]  }
  0x60   :  { %923 = vmatprep.subr.bf16.mxu1 %v2226_v22  ;;  %v177_v61 = vrot.slane %v163_v56, %v2761_v50  ;;  %v2278_v7 = vld [vmem:[#allocation11 + $0x94] ss:$8 sps:$4 sm:$0xff]   ;;  %v2282_v9 = vld [vmem:[#allocation11 + $0x90] ss:$8 sps:$4 sm:$0xff]   ;;  %v2284_v11 = vld [vmem:[#allocation11 + $0x84] ss:$8 sps:$4 sm:$0xff]  }
  0x61   :  { %v178_v60 = vcombine.high %v170_v55, %v170_v55  ;;  %v2280_v8 = vld [vmem:[#allocation11 + $0x194] ss:$8 sps:$4 sm:$0xff]   ;;  %v2283_v10 = vld [vmem:[#allocation11 + $0x190] ss:$8 sps:$4 sm:$0xff]   ;;  %v2286_v12 = vld [vmem:[#allocation11 + $0x184] ss:$8 sps:$4 sm:$0xff]   ;;  %v194_v17 = vpack.c.bf16 %v170_v55, %v170_v55 }
  0x62   :  { %883 = vmatpush1.bf16.msra.mxu0 %v2228_v23  ;;  %v179_v0 = vcombine.high %v177_v61, %v177_v61  ;;  %v2288_v13 = vld [vmem:[#allocation11 + $0x80] ss:$8 sps:$4 sm:$0xff]   ;;  %v2293_v15 = vld [vmem:[#allocation11 + $0x274] ss:$8 sps:$4 sm:$0xff]   ;;  %v196_v18 = vpack.c.bf16 %v177_v61, %v177_v61  ;;  %v2291_v19 = vld [vmem:[#allocation11 + $0x270] ss:$8 sps:$4 sm:$0xff]  }
  0x63   :  { %924 = vmatpush1.bf16.msra.mxu1 %v2229_v24  ;;  %884 = vmatprep.subr.bf16.mxu0 %v2230_v25  ;;  %v195_v63 = vpack.c.bf16 %v178_v60, %v178_v60  ;;  %v2289_v14 = vld [vmem:[#allocation11 + $0x180] ss:$8 sps:$4 sm:$0xff]   ;;  %v2296_v16 = vld [vmem:[#allocation9 + $0x74] ss:$8 sps:$4 sm:$0xff]   ;;  %v2294_v20 = vld [vmem:[#allocation9 + $0x70] ss:$8 sps:$4 sm:$0xff]  }
  0x64   :  { %925 = vmatprep.subr.bf16.mxu1 %v2232_v26  ;;  %v197_v4 = vpack.c.bf16 %v179_v0, %v179_v0  ;;  %v2299_v21 = vld [vmem:[#allocation11 + $0x264] ss:$8 sps:$4 sm:$0xff]   ;;  %v2297_v23 = vld [vmem:[#allocation11 + $0x260] ss:$8 sps:$4 sm:$0xff]   ;;  %v2305_v25 = vld [vmem:[#allocation11 + $0x254] ss:$8 sps:$4 sm:$0xff]  }
  0x65   :  { %904 = vmatprep.mubr.bf16.mxu0 %v195_v63  ;;  %v2302_v22 = vld [vmem:[#allocation9 + $0x64] ss:$8 sps:$4 sm:$0xff]   ;;  %v2300_v24 = vld [vmem:[#allocation9 + $0x60] ss:$8 sps:$4 sm:$0xff]   ;;  %v2308_v26 = vld [vmem:[#allocation9 + $0x54] ss:$8 sps:$4 sm:$0xff]  }
  0x66   :  { %885 = vmatpush1.bf16.msra.mxu0 %v2234_v27  ;;  %945 = vmatprep.mubr.bf16.mxu1 %v197_v4  ;;  %v2667_v27 = vmov 0   ;;  %v2318_v37 = vld [vmem:[#allocation9 + $0x30] ss:$8 sps:$4 sm:$0xff]   ;;  %v2323_v38 = vld [vmem:[#allocation11 + $0x224] ss:$8 sps:$4 sm:$0xff]   ;;  %vm2669_vm2 = vmmov 0  }
  0x67   :  { %926 = vmatpush1.bf16.msra.mxu1 %v2235_v28  ;;  %886 = vmatprep.subr.bf16.mxu0 %v2236_v29  ;;  %v2303_v28 = vld [vmem:[#allocation11 + $0x250] ss:$8 sps:$4 sm:$0xff]   ;;  %v2326_v39 = vld [vmem:[#allocation9 + $0x24] ss:$8 sps:$4 sm:$0xff]   ;;  %v2332_v43 = vld [vmem:[#allocation9 + $0x14] ss:$8 sps:$4 sm:$0xff]  }
  0x68   :  { %927 = vmatprep.subr.bf16.mxu1 %v2238_v30  ;;  %2193 = vset.pattern.permute.xlu0 %v2667_v27  ;;  %v2306_v29 = vld [vmem:[#allocation9 + $0x50] ss:$8 sps:$4 sm:$0xff]   ;;  %v2311_v30 = vld [vmem:[#allocation11 + $0x244] ss:$8 sps:$4 sm:$0xff]   ;;  %v2344_v60 = vld [vmem:[#allocation9 + $0xf4] ss:$8 sps:$4 sm:$0xff]  }
  0x69   :  { %v2339_v61 = vld [vmem:[#allocation11 + $0x2f0] ss:$8 sps:$4 sm:$0xff]   ;;  %v2347_v63 = vld [vmem:[#allocation11 + $0x2e4] ss:$8 sps:$4 sm:$0xff]   ;;  %v2356_v4 = vld [vmem:[#allocation9 + $0xd4] ss:$8 sps:$4 sm:$0xff]  }
  0x6a   :  { %887 = vmatpush1.bf16.msra.mxu0 %v2240_v31  ;;  %v2314_v31 = vld [vmem:[#allocation9 + $0x44] ss:$8 sps:$4 sm:$0xff]   ;;  %vm1912_vm3 = vcmask 8192  }
  0x6b   :  { %928 = vmatpush1.bf16.msra.mxu1 %v2241_v32  ;;  %888 = vmatprep.subr.bf16.mxu0 %v2242_v33  ;;  %v2309_v32 = vld [vmem:[#allocation11 + $0x240] ss:$8 sps:$4 sm:$0xff]   ;;  %v2350_v0 = vld [vmem:[#allocation9 + $0xe4] ss:$8 sps:$4 sm:$0xff]  }
  0x6c   :  { %929 = vmatprep.subr.bf16.mxu1 %v2244_v34  ;;  %v2312_v33 = vld [vmem:[#allocation9 + $0x40] ss:$8 sps:$4 sm:$0xff]   ;;  %v2317_v34 = vld [vmem:[#allocation11 + $0x234] ss:$8 sps:$4 sm:$0xff]  }
  0x6e   :  { %889 = vmatpush2.bf16.msra.mxu0 %v2246_v35  ;;  %v2320_v35 = vld [vmem:[#allocation9 + $0x34] ss:$8 sps:$4 sm:$0xff]  }
  0x6f   :  { %930 = vmatpush2.bf16.msra.mxu1 %v2247_v36  ;;  %890 = vmatprep.subr.bf16.mxu0 %v2248_v40  ;;  %v2315_v36 = vld [vmem:[#allocation11 + $0x230] ss:$8 sps:$4 sm:$0xff]   ;;  %v2321_v40 = vld [vmem:[#allocation11 + $0x220] ss:$8 sps:$4 sm:$0xff]  }
  0x70   :  { %931 = vmatprep.subr.bf16.mxu1 %v2250_v41  ;;  %v2324_v41 = vld [vmem:[#allocation9 + $0x20] ss:$8 sps:$4 sm:$0xff]  }
  0x72   :  { %891 = vmatpush2.bf16.msra.mxu0 %v2252_v42  ;;  %v2329_v42 = vld [vmem:[#allocation11 + $0x214] ss:$8 sps:$4 sm:$0xff]  }
  0x73   :  { %932 = vmatpush2.bf16.msra.mxu1 %v2253_v45  ;;  %892 = vmatprep.subr.bf16.mxu0 %v2254_v46  ;;  %v2766_v45 = vld [vmem:[#allocation3] sm:$0xff]  ;;  %v2768_v46 = vld.sshfl [vmem:[#allocation6 + $0x8] sm:$0x33 pattern:$0x76325410] }
  0x74   :  { %933 = vmatprep.subr.bf16.mxu1 %v2256_v47  ;;  %v2772_v47 = vrot.slane %v2766_v45, %v2761_v50 }
  0x76   :  { %893 = vmatpush2.bf16.msra.mxu0 %v2258_v48  ;;  %v2327_v48 = vld [vmem:[#allocation11 + $0x210] ss:$8 sps:$4 sm:$0xff]   ;;  %v137_v53 = vcombine.high %v2772_v47, %v2772_v47 }
  0x77   :  { %934 = vmatpush2.bf16.msra.mxu1 %v2259_v49  ;;  %894 = vmatprep.subr.bf16.mxu0 %v2260_v51  ;;  %v187_v49 = vcombine.high %v2768_v46, %v2768_v46  ;;  %v2330_v51 = vld [vmem:[#allocation9 + $0x10] ss:$8 sps:$4 sm:$0xff]  }
  0x78   :  { %935 = vmatprep.subr.bf16.mxu1 %v2262_v52  ;;  %v2335_v52 = vld [vmem:[#allocation11 + $0x204] ss:$8 sps:$4 sm:$0xff]   ;;  %v154_v56 = vpack.c.bf16 %v137_v53, %v137_v53  ;;  %v2408_v53 = vld [vmem:[#allocation9 + $0x240] ss:$8 sps:$4 sm:$0xff]  }
  0x79   :  { %v199_v55 = vpack.c.bf16 %v187_v49, %v187_v49  ;;  %v2407_v49 = vld [vmem:[#allocation9 + $0x144] ss:$8 sps:$4 sm:$0xff]  }
  0x7a   :  { %895 = vmatpush2.bf16.msra.mxu0 %v2264_v54  ;;  %v2338_v54 = vld [vmem:[#allocation9 + $0x4] ss:$8 sps:$4 sm:$0xff]  }
  0x7b   :  { %936 = vmatpush2.bf16.msra.mxu1 %v2265_v57  ;;  %896 = vmatprep.subr.bf16.mxu0 %v2266_v58  ;;  %v2333_v57 = vld [vmem:[#allocation11 + $0x200] ss:$8 sps:$4 sm:$0xff]  }
  0x7c   :  { %937 = vmatprep.subr.bf16.mxu1 %v2268_v59  ;;  %v2336_v58 = vld [vmem:[#allocation9] ss:$8 sps:$4 sm:$0xff]   ;;  %v2341_v59 = vld [vmem:[#allocation11 + $0x2f4] ss:$8 sps:$4 sm:$0xff]  }
  0x7e   :  { %897 = vmatpush2.bf16.msra.mxu0 %v2270_v62  ;;  %v2342_v62 = vld [vmem:[#allocation9 + $0xf0] ss:$8 sps:$4 sm:$0xff]  }
  0x7f   :  { %938 = vmatpush2.bf16.msra.mxu1 %v2271_v1  ;;  %898 = vmatprep.subr.bf16.mxu0 %v2272_v2  ;;  %v2345_v1 = vld [vmem:[#allocation11 + $0x2e0] ss:$8 sps:$4 sm:$0xff]  }
  0x80   :  { %939 = vmatprep.subr.bf16.mxu1 %v2274_v3  ;;  %v2348_v2 = vld [vmem:[#allocation9 + $0xe0] ss:$8 sps:$4 sm:$0xff]   ;;  %v2353_v3 = vld [vmem:[#allocation11 + $0x2d4] ss:$8 sps:$4 sm:$0xff]  }
  0x82   :  { %899 = vmatpush2.bf16.msra.mxu0 %v2276_v5  ;;  %v2351_v5 = vld [vmem:[#allocation11 + $0x2d0] ss:$8 sps:$4 sm:$0xff]  }
  0x83   :  { %940 = vmatpush2.bf16.msra.mxu1 %v2277_v6  ;;  %900 = vmatprep.subr.bf16.mxu0 %v2278_v7  ;;  %v2354_v6 = vld [vmem:[#allocation9 + $0xd0] ss:$8 sps:$4 sm:$0xff]   ;;  %v2359_v7 = vld [vmem:[#allocation11 + $0x2c4] ss:$8 sps:$4 sm:$0xff]  }
  0x84   :  { %941 = vmatprep.subr.bf16.mxu1 %v2280_v8  ;;  %v2362_v8 = vld [vmem:[#allocation9 + $0xc4] ss:$8 sps:$4 sm:$0xff]  }
  0x86   :  { %901 = vmatpush2.bf16.msra.mxu0 %v2282_v9  ;;  %v2357_v9 = vld [vmem:[#allocation11 + $0x2c0] ss:$8 sps:$4 sm:$0xff]  }
  0x87   :  { %942 = vmatpush2.bf16.msra.mxu1 %v2283_v10  ;;  %902 = vmatprep.subr.bf16.mxu0 %v2284_v11  ;;  %v2360_v10 = vld [vmem:[#allocation9 + $0xc0] ss:$8 sps:$4 sm:$0xff]   ;;  %v2365_v11 = vld [vmem:[#allocation11 + $0x2b4] ss:$8 sps:$4 sm:$0xff]  }
  0x88   :  { %943 = vmatprep.subr.bf16.mxu1 %v2286_v12  ;;  %v2368_v12 = vld [vmem:[#allocation9 + $0xb4] ss:$8 sps:$4 sm:$0xff]  }
  0x8a   :  { %903 = vmatpush2.bf16.msra.mxu0 %v2288_v13  ;;  %v2363_v13 = vld [vmem:[#allocation11 + $0x2b0] ss:$8 sps:$4 sm:$0xff]  }
  0x8b   :  { %944 = vmatpush2.bf16.msra.mxu1 %v2289_v14  ;;  %954 = vmatprep.subr.bf16.mxu0 %v2293_v15  ;;  %v2366_v14 = vld [vmem:[#allocation9 + $0xb0] ss:$8 sps:$4 sm:$0xff]   ;;  %v2371_v15 = vld [vmem:[#allocation11 + $0x2a4] ss:$8 sps:$4 sm:$0xff]  }
  0x8c   :  { %1475 = vmatprep.subr.bf16.mxu1 %v2296_v16  ;;  %v2374_v16 = vld [vmem:[#allocation9 + $0xa4] ss:$8 sps:$4 sm:$0xff]  }
  0x8d   :  { %905 = vmatmul.mubr.bf16.vlgmr.msra.gmra.mxu0 %v194_v17  ;;  %v2369_v17 = vld [vmem:[#allocation11 + $0x2a0] ss:$8 sps:$4 sm:$0xff]  }
  0x8e   :  { %946 = vmatmul.mubr.bf16.vlgmr.msra.gmra.mxu1 %v196_v18  ;;  %955 = vmatpush1.bf16.msra.mxu0 %v2291_v19  ;;  %v2372_v18 = vld [vmem:[#allocation9 + $0xa0] ss:$8 sps:$4 sm:$0xff]   ;;  %v2377_v19 = vld [vmem:[#allocation11 + $0x294] ss:$8 sps:$4 sm:$0xff]  }
  0x8f   :  { %1476 = vmatpush1.bf16.msra.mxu1 %v2294_v20  ;;  %956 = vmatprep.subr.bf16.mxu0 %v2299_v21  ;;  %v2380_v20 = vld [vmem:[#allocation9 + $0x94] ss:$8 sps:$4 sm:$0xff]   ;;  %v122_v21 = vcombine.high %v2766_v45, %v2766_v45 }
  0x90   :  { %1477 = vmatprep.subr.bf16.mxu1 %v2302_v22  ;;  %986 = vmatprep.mubr.bf16.mxu0 %v199_v55  ;;  %v2375_v22 = vld [vmem:[#allocation11 + $0x290] ss:$8 sps:$4 sm:$0xff]   ;;  %v2404_v45 = vld [vmem:[#allocation9 + $0x254] ss:$8 sps:$4 sm:$0xff]  }
  0x91   :  { %1507 = vmatprep.mubr.bf16.mxu1 %v154_v56  ;;  %v2416_v55 = vld [vmem:[#allocation9 + $0x234] ss:$8 sps:$4 sm:$0xff]   ;;  %v2411_v56 = vld [vmem:[#allocation9 + $0x130] ss:$8 sps:$4 sm:$0xff]  }
  0x92   :  { %957 = vmatpush1.bf16.msra.mxu0 %v2297_v23  ;;  %v2378_v23 = vld [vmem:[#allocation9 + $0x90] ss:$8 sps:$4 sm:$0xff]  }
  0x93   :  { %1478 = vmatpush1.bf16.msra.mxu1 %v2300_v24  ;;  %958 = vmatprep.subr.bf16.mxu0 %v2305_v25  ;;  %v2383_v24 = vld [vmem:[#allocation11 + $0x284] ss:$8 sps:$4 sm:$0xff]  }
  0x94   :  { %1479 = vmatprep.subr.bf16.mxu1 %v2308_v26  ;;  %v2386_v25 = vld [vmem:[#allocation9 + $0x84] ss:$8 sps:$4 sm:$0xff]   ;;  %v2781_v26 = vrot.slane %v122_v21, %v2761_v50  ;;  %v2390_v50 = vld [vmem:[#allocation9 + $0x270] ss:$8 sps:$4 sm:$0xff]   ;;  %v2456_v21 = vld [vmem:[#allocation9 + $0x2c0] ss:$8 sps:$4 sm:$0xff]  }
  0x96   :  { %959 = vmatpush1.bf16.msra.mxu0 %v2303_v28  ;;  %v2381_v28 = vld [vmem:[#allocation11 + $0x280] ss:$8 sps:$4 sm:$0xff]  }
  0x97   :  { %1480 = vmatpush1.bf16.msra.mxu1 %v2306_v29  ;;  %960 = vmatprep.subr.bf16.mxu0 %v2311_v30  ;;  %v2384_v29 = vld [vmem:[#allocation9 + $0x80] ss:$8 sps:$4 sm:$0xff]   ;;  %v2389_v30 = vld [vmem:[#allocation9 + $0x174] ss:$8 sps:$4 sm:$0xff]  }
  0x98   :  { %1481 = vmatprep.subr.bf16.mxu1 %v2314_v31  ;;  %v2392_v31 = vld [vmem:[#allocation9 + $0x274] ss:$8 sps:$4 sm:$0xff]  }
  0x9a   :  { %961 = vmatpush1.bf16.msra.mxu0 %v2309_v32  ;;  %v138_v32 = vcombine.high %v2781_v26, %v2781_v26 }
  0x9b   :  { %1482 = vmatpush1.bf16.msra.mxu1 %v2312_v33  ;;  %962 = vmatprep.subr.bf16.mxu0 %v2317_v34  ;;  %v198_v33 = vpack.c.bf16 %v2768_v46, %v2768_v46  ;;  %v2387_v34 = vld [vmem:[#allocation9 + $0x170] ss:$8 sps:$4 sm:$0xff]  }
  0x9c   :  { %1483 = vmatprep.subr.bf16.mxu1 %v2320_v35  ;;  %v153_v35 = vpack.c.bf16 %v2772_v47, %v2772_v47  ;;  %v2399_v47 = vld [vmem:[#allocation9 + $0x150] ss:$8 sps:$4 sm:$0xff]  }
  0x9e   :  { %963 = vmatpush1.bf16.msra.mxu0 %v2315_v36  ;;  %v2395_v36 = vld [vmem:[#allocation9 + $0x164] ss:$8 sps:$4 sm:$0xff]  }
  0x9f   :  { %1484 = vmatpush1.bf16.msra.mxu1 %v2318_v37  ;;  %964 = vmatprep.subr.bf16.mxu0 %v2323_v38  ;;  %v2398_v37 = vld [vmem:[#allocation9 + $0x264] ss:$8 sps:$4 sm:$0xff]   ;;  %v2789_v38 = vld.sshfl [vmem:[#allocation3 + $0x8] sm:$0x33 pattern:$0x76325410] }
  0xa0   :  { %1485 = vmatprep.subr.bf16.mxu1 %v2326_v39  ;;  %v2393_v39 = vld [vmem:[#allocation9 + $0x160] ss:$8 sps:$4 sm:$0xff]  }
  0xa2   :  { %965 = vmatpush1.bf16.msra.mxu0 %v2321_v40  ;;  %v2396_v40 = vld [vmem:[#allocation9 + $0x260] ss:$8 sps:$4 sm:$0xff]  }
  0xa3   :  { %1486 = vmatpush1.bf16.msra.mxu1 %v2324_v41  ;;  %966 = vmatprep.subr.bf16.mxu0 %v2329_v42  ;;  %v156_v41 = vpack.c.bf16 %v138_v32, %v138_v32  ;;  %v146_v42 = vcombine.high %v2789_v38, %v2789_v38  ;;  %v2473_v32 = vld [vmem:[#allocation9 + $0x194] ss:$8 sps:$4 sm:$0xff]  }
  0xa4   :  { %1487 = vmatprep.subr.bf16.mxu1 %v2332_v43  ;;  %v2401_v43 = vld [vmem:[#allocation9 + $0x154] ss:$8 sps:$4 sm:$0xff]  }
  0xa5   :  { %v158_v46 = vpack.c.bf16 %v146_v42, %v146_v42 }
  0xa6   :  { %967 = vmatpush1.bf16.msra.mxu0 %v2327_v48  ;;  %v2402_v48 = vld [vmem:[#allocation9 + $0x250] ss:$8 sps:$4 sm:$0xff]  }
  0xa7   :  { %1488 = vmatpush1.bf16.msra.mxu1 %v2330_v51  ;;  %968 = vmatprep.subr.bf16.mxu0 %v2335_v52  ;;  %v2410_v51 = vld [vmem:[#allocation9 + $0x244] ss:$8 sps:$4 sm:$0xff]   ;;  %v2405_v52 = vld [vmem:[#allocation9 + $0x140] ss:$8 sps:$4 sm:$0xff]  }
  0xa8   :  { %1489 = vmatprep.subr.bf16.mxu1 %v2338_v54  ;;  %v2413_v54 = vld [vmem:[#allocation9 + $0x134] ss:$8 sps:$4 sm:$0xff]  }
  0xaa   :  { %969 = vmatpush1.bf16.msra.mxu0 %v2333_v57  ;;  %v2414_v57 = vld [vmem:[#allocation9 + $0x230] ss:$8 sps:$4 sm:$0xff]  }
  0xab   :  { %1490 = vmatpush1.bf16.msra.mxu1 %v2336_v58  ;;  %970 = vmatprep.subr.bf16.mxu0 %v2341_v59  ;;  %v2419_v58 = vld [vmem:[#allocation9 + $0x124] ss:$8 sps:$4 sm:$0xff]  }
  0xac   :  { %1491 = vmatprep.subr.bf16.mxu1 %v2344_v60  ;;  %v2422_v59 = vld [vmem:[#allocation9 + $0x224] ss:$8 sps:$4 sm:$0xff]   ;;  %v2417_v60 = vld [vmem:[#allocation9 + $0x120] ss:$8 sps:$4 sm:$0xff]  }
  0xae   :  { %971 = vmatpush2.bf16.msra.mxu0 %v2339_v61  ;;  %v2420_v61 = vld [vmem:[#allocation9 + $0x220] ss:$8 sps:$4 sm:$0xff]  }
  0xaf   :  { %1492 = vmatpush2.bf16.msra.mxu1 %v2342_v62  ;;  %972 = vmatprep.subr.bf16.mxu0 %v2347_v63  ;;  %v2425_v62 = vld [vmem:[#allocation9 + $0x114] ss:$8 sps:$4 sm:$0xff]  }
  0xb0   :  { %1493 = vmatprep.subr.bf16.mxu1 %v2350_v0  ;;  %v2428_v63 = vld [vmem:[#allocation9 + $0x214] ss:$8 sps:$4 sm:$0xff]   ;;  %v2423_v0 = vld [vmem:[#allocation9 + $0x110] ss:$8 sps:$4 sm:$0xff]  }
  0xb2   :  { %973 = vmatpush2.bf16.msra.mxu0 %v2345_v1  ;;  %v2426_v1 = vld [vmem:[#allocation9 + $0x210] ss:$8 sps:$4 sm:$0xff]  }
  0xb3   :  { %1494 = vmatpush2.bf16.msra.mxu1 %v2348_v2  ;;  %974 = vmatprep.subr.bf16.mxu0 %v2353_v3  ;;  %v2431_v2 = vld [vmem:[#allocation9 + $0x104] ss:$8 sps:$4 sm:$0xff]  }
  0xb4   :  { %1495 = vmatprep.subr.bf16.mxu1 %v2356_v4  ;;  %v2434_v3 = vld [vmem:[#allocation9 + $0x204] ss:$8 sps:$4 sm:$0xff]   ;;  %v2429_v4 = vld [vmem:[#allocation9 + $0x100] ss:$8 sps:$4 sm:$0xff]  }
  0xb6   :  { %975 = vmatpush2.bf16.msra.mxu0 %v2351_v5  ;;  %v2432_v5 = vld [vmem:[#allocation9 + $0x200] ss:$8 sps:$4 sm:$0xff]  }
  0xb7   :  { %1496 = vmatpush2.bf16.msra.mxu1 %v2354_v6  ;;  %976 = vmatprep.subr.bf16.mxu0 %v2359_v7  ;;  %v2437_v6 = vld [vmem:[#allocation9 + $0x1f4] ss:$8 sps:$4 sm:$0xff]  }
  0xb8   :  { %1497 = vmatprep.subr.bf16.mxu1 %v2362_v8  ;;  %v2440_v7 = vld [vmem:[#allocation9 + $0x2f4] ss:$8 sps:$4 sm:$0xff]   ;;  %v2435_v8 = vld [vmem:[#allocation9 + $0x1f0] ss:$8 sps:$4 sm:$0xff]  }
  0xba   :  { %977 = vmatpush2.bf16.msra.mxu0 %v2357_v9  ;;  %v2438_v9 = vld [vmem:[#allocation9 + $0x2f0] ss:$8 sps:$4 sm:$0xff]  }
  0xbb   :  { %1498 = vmatpush2.bf16.msra.mxu1 %v2360_v10  ;;  %978 = vmatprep.subr.bf16.mxu0 %v2365_v11  ;;  %v2443_v10 = vld [vmem:[#allocation9 + $0x1e4] ss:$8 sps:$4 sm:$0xff]  }
  0xbc   :  { %1499 = vmatprep.subr.bf16.mxu1 %v2368_v12  ;;  %v2446_v11 = vld [vmem:[#allocation9 + $0x2e4] ss:$8 sps:$4 sm:$0xff]   ;;  %v2441_v12 = vld [vmem:[#allocation9 + $0x1e0] ss:$8 sps:$4 sm:$0xff]  }
  0xbe   :  { %979 = vmatpush2.bf16.msra.mxu0 %v2363_v13  ;;  %v2444_v13 = vld [vmem:[#allocation9 + $0x2e0] ss:$8 sps:$4 sm:$0xff]  }
  0xbf   :  { %1500 = vmatpush2.bf16.msra.mxu1 %v2366_v14  ;;  %980 = vmatprep.subr.bf16.mxu0 %v2371_v15  ;;  %v2449_v14 = vld [vmem:[#allocation9 + $0x1d4] ss:$8 sps:$4 sm:$0xff]  }
  0xc0   :  { %1501 = vmatprep.subr.bf16.mxu1 %v2374_v16  ;;  %v2452_v15 = vld [vmem:[#allocation9 + $0x2d4] ss:$8 sps:$4 sm:$0xff]   ;;  %v2447_v16 = vld [vmem:[#allocation9 + $0x1d0] ss:$8 sps:$4 sm:$0xff]  }
  0xc2   :  { %981 = vmatpush2.bf16.msra.mxu0 %v2369_v17  ;;  %v2450_v17 = vld [vmem:[#allocation9 + $0x2d0] ss:$8 sps:$4 sm:$0xff]  }
  0xc3   :  { %1502 = vmatpush2.bf16.msra.mxu1 %v2372_v18  ;;  %982 = vmatprep.subr.bf16.mxu0 %v2377_v19  ;;  %v2455_v18 = vld [vmem:[#allocation9 + $0x1c4] ss:$8 sps:$4 sm:$0xff]  }
  0xc4   :  { %1503 = vmatprep.subr.bf16.mxu1 %v2380_v20  ;;  %v2458_v19 = vld [vmem:[#allocation9 + $0x2c4] ss:$8 sps:$4 sm:$0xff]   ;;  %v2453_v20 = vld [vmem:[#allocation9 + $0x1c0] ss:$8 sps:$4 sm:$0xff]  }
  0xc6   :  { %983 = vmatpush2.bf16.msra.mxu0 %v2375_v22  ;;  %v2461_v22 = vld [vmem:[#allocation9 + $0x1b4] ss:$8 sps:$4 sm:$0xff]  }
  0xc7   :  { %1504 = vmatpush2.bf16.msra.mxu1 %v2378_v23  ;;  %984 = vmatprep.subr.bf16.mxu0 %v2383_v24  ;;  %v2464_v23 = vld [vmem:[#allocation9 + $0x2b4] ss:$8 sps:$4 sm:$0xff]   ;;  %v2459_v24 = vld [vmem:[#allocation9 + $0x1b0] ss:$8 sps:$4 sm:$0xff]  }
  0xc8   :  { %1505 = vmatprep.subr.bf16.mxu1 %v2386_v25  ;;  %v2462_v25 = vld [vmem:[#allocation9 + $0x2b0] ss:$8 sps:$4 sm:$0xff]  }
  0xca   :  { %985 = vmatpush2.bf16.msra.mxu0 %v2381_v28  ;;  %v2467_v28 = vld [vmem:[#allocation9 + $0x1a4] ss:$8 sps:$4 sm:$0xff]  }
  0xcb   :  { %1506 = vmatpush2.bf16.msra.mxu1 %v2384_v29  ;;  %1516 = vmatprep.subr.bf16.mxu0 %v2389_v30  ;;  %v2470_v29 = vld [vmem:[#allocation9 + $0x2a4] ss:$8 sps:$4 sm:$0xff]   ;;  %v2465_v30 = vld [vmem:[#allocation9 + $0x1a0] ss:$8 sps:$4 sm:$0xff]  }
  0xcc   :  { %1557 = vmatprep.subr.bf16.mxu1 %v2392_v31  ;;  %v2468_v31 = vld [vmem:[#allocation9 + $0x2a0] ss:$8 sps:$4 sm:$0xff]  }
  0xcd   :  { %987 = vmatmul.mubr.bf16.vlgmr.msra.gmra.mxu0 %v198_v33  ;;  %v2476_v33 = vld [vmem:[#allocation9 + $0x294] ss:$8 sps:$4 sm:$0xff]  }
  0xce   :  { %1508 = vmatmul.mubr.bf16.vlgmr.msra.gmra.mxu1 %v153_v35  ;;  %1517 = vmatpush1.bf16.msra.mxu0 %v2387_v34  ;;  %v2471_v34 = vld [vmem:[#allocation9 + $0x190] ss:$8 sps:$4 sm:$0xff]  }
  0xcf   :  { %1558 = vmatpush1.bf16.msra.mxu1 %v2390_v50  ;;  %1518 = vmatprep.subr.bf16.mxu0 %v2395_v36  ;;  %v2474_v35 = vld [vmem:[#allocation9 + $0x290] ss:$8 sps:$4 sm:$0xff]   ;;  %v2479_v50 = vld [vmem:[#allocation9 + $0x184] ss:$8 sps:$4 sm:$0xff]  }
  0xd0   :  { %1559 = vmatprep.subr.bf16.mxu1 %v2398_v37  ;;  %1548 = vmatprep.mubr.bf16.mxu0 %v156_v41  ;;  %v2482_v36 = vld [vmem:[#allocation9 + $0x284] ss:$8 sps:$4 sm:$0xff]   ;;  %v1599_v37 = vld [vmem:[#allocation8] sm:$0xff] }
  0xd1   :  { %1589 = vmatprep.mubr.bf16.mxu1 %v158_v46  ;;  %v2127_v41 = vcombine.high %v1599_v37, %v1599_v37  ;;  %v2126_v42 = vcombine.low %v1599_v37, %v1599_v37 }
  0xd2   :  { %1519 = vmatpush1.bf16.msra.mxu0 %v2393_v39  ;;  %v2477_v39 = vld [vmem:[#allocation9 + $0x180] ss:$8 sps:$4 sm:$0xff]  }
  0xd3   :  { %1560 = vmatpush1.bf16.msra.mxu1 %v2396_v40  ;;  %1520 = vmatprep.subr.bf16.mxu0 %v2401_v43  ;;  %v2480_v40 = vld [vmem:[#allocation9 + $0x280] ss:$8 sps:$4 sm:$0xff]   ;;  %v157_v43 = vpack.c.bf16 %v2789_v38, %v2789_v38  ;;  %v1611_v46 = vsel %vm1609_vm0, %v2126_v42, 0  ;;  %v2488_v38 = vld [vmem:[#allocation12 + $0x70] sm:$0xff]  }
  0xd4   :  { %1561 = vmatprep.subr.bf16.mxu1 %v2404_v45  ;;  %v155_v45 = vpack.c.bf16 %v2781_v26, %v2781_v26  ;;  %v2489_v26 = vld [vmem:[#allocation12 + $0x30] sm:$0xff]  }
  0xd6   :  { %1521 = vmatpush1.bf16.msra.mxu0 %v2399_v47  ;;  %v1598_v47 = vld [vmem:[%s2815_s0] sm:$0x1] }
  0xd7   :  { %1562 = vmatpush1.bf16.msra.mxu1 %v2402_v48  ;;  %1522 = vmatprep.subr.bf16.mxu0 %v2407_v49  ;;  %v2486_v48 = vld [vmem:[#allocation12 + $0x78] sm:$0xff]  }
  0xd8   :  { %1563 = vmatprep.subr.bf16.mxu1 %v2410_v51  ;;  %v2487_v49 = vld [vmem:[#allocation12 + $0x38] sm:$0xff]   ;;  %v2490_v51 = vld [vmem:[#allocation12 + $0x68] sm:$0xff]  }
  0xda   :  { %1523 = vmatpush1.bf16.msra.mxu0 %v2405_v52  ;;  %v2491_v52 = vld [vmem:[#allocation12 + $0x28] sm:$0xff]  }
  0xdb   :  { %1564 = vmatpush1.bf16.msra.mxu1 %v2408_v53  ;;  %1524 = vmatprep.subr.bf16.mxu0 %v2413_v54  ;;  %v2492_v53 = vld [vmem:[#allocation12 + $0x60] sm:$0xff]  }
  0xdc   :  { %1565 = vmatprep.subr.bf16.mxu1 %v2416_v55 }
  0xde   :  { %1525 = vmatpush1.bf16.msra.mxu0 %v2411_v56 }
  0xdf   :  { %1566 = vmatpush1.bf16.msra.mxu1 %v2414_v57  ;;  %1526 = vmatprep.subr.bf16.mxu0 %v2419_v58 }
  0xe0   :  { %1567 = vmatprep.subr.bf16.mxu1 %v2422_v59  ;;  %v2494_v59 = vld [vmem:[#allocation12 + $0x58] sm:$0xff]  }
  0xe2   :  { %1527 = vmatpush1.bf16.msra.mxu0 %v2417_v60 }
  0xe3   :  { %1568 = vmatpush1.bf16.msra.mxu1 %v2420_v61  ;;  %1528 = vmatprep.subr.bf16.mxu0 %v2425_v62  ;;  %v2495_v61 = vld [vmem:[#allocation12 + $0x18] sm:$0xff]  }
  0xe4   :  { %1569 = vmatprep.subr.bf16.mxu1 %v2428_v63 }
  0xe6   :  { %1529 = vmatpush1.bf16.msra.mxu0 %v2423_v0 }
  0xe7   :  { %1570 = vmatpush1.bf16.msra.mxu1 %v2426_v1  ;;  %1530 = vmatprep.subr.bf16.mxu0 %v2431_v2  ;;  %v2496_v2 = vld [vmem:[#allocation12 + $0x50] sm:$0xff]  }
  0xe8   :  { %1571 = vmatprep.subr.bf16.mxu1 %v2434_v3  ;;  %v2497_v3 = vld [vmem:[#allocation12 + $0x10] sm:$0xff]  }
  0xea   :  { %1531 = vmatpush1.bf16.msra.mxu0 %v2429_v4  ;;  %v2498_v4 = vld [vmem:[#allocation12 + $0x48] sm:$0xff]  }
  0xeb   :  { %1572 = vmatpush1.bf16.msra.mxu1 %v2432_v5  ;;  %1532 = vmatprep.subr.bf16.mxu0 %v2437_v6  ;;  %v2499_v5 = vld [vmem:[#allocation12 + $0x8] sm:$0xff]   ;;  %v2500_v6 = vld [vmem:[#allocation12 + $0x40] sm:$0xff]  }
  0xec   :  { %1573 = vmatprep.subr.bf16.mxu1 %v2440_v7  ;;  %v2501_v7 = vld [vmem:[#allocation12] sm:$0xff]  }
  0xee   :  { %1533 = vmatpush2.bf16.msra.mxu0 %v2435_v8 }
  0xef   :  { %1574 = vmatpush2.bf16.msra.mxu1 %v2438_v9  ;;  %1534 = vmatprep.subr.bf16.mxu0 %v2443_v10 }
  0xf0   :  { %1575 = vmatprep.subr.bf16.mxu1 %v2446_v11 }
  0xf2   :  { %1535 = vmatpush2.bf16.msra.mxu0 %v2441_v12 }
  0xf3   :  { %1576 = vmatpush2.bf16.msra.mxu1 %v2444_v13  ;;  %1536 = vmatprep.subr.bf16.mxu0 %v2449_v14 }
  0xf4   :  { %1577 = vmatprep.subr.bf16.mxu1 %v2452_v15 }
  0xf6   :  { %1537 = vmatpush2.bf16.msra.mxu0 %v2447_v16 }
  0xf7   :  { %1578 = vmatpush2.bf16.msra.mxu1 %v2450_v17  ;;  %1538 = vmatprep.subr.bf16.mxu0 %v2455_v18 }
  0xf8   :  { %1579 = vmatprep.subr.bf16.mxu1 %v2458_v19 }
  0xfa   :  { %1539 = vmatpush2.bf16.msra.mxu0 %v2453_v20 }
  0xfb   :  { %1580 = vmatpush2.bf16.msra.mxu1 %v2456_v21  ;;  %1540 = vmatprep.subr.bf16.mxu0 %v2461_v22 }
  0xfc   :  { %1581 = vmatprep.subr.bf16.mxu1 %v2464_v23 }
  0xfe   :  { %1541 = vmatpush2.bf16.msra.mxu0 %v2459_v24 }
  0xff   :  { %1582 = vmatpush2.bf16.msra.mxu1 %v2462_v25  ;;  %1542 = vmatprep.subr.bf16.mxu0 %v2467_v28  ;;  %v1663_v25 = vsub.s32 0, %v2758_v44 }
 0x100   :  { %1583 = vmatprep.subr.bf16.mxu1 %v2470_v29 }
 0x102   :  { %1543 = vmatpush2.bf16.msra.mxu0 %v2465_v30  ;;  %v1659_v30 = vld [vmem:[%s2821_s6] sm:$0x3] }
 0x103   :  { %1584 = vmatpush2.bf16.msra.mxu1 %v2468_v31  ;;  %1544 = vmatprep.subr.bf16.mxu0 %v2473_v32  ;;  %v1667_v32 = vsub.s32 1, %v2758_v44  ;;  %v2668_v44 = vmov 0.0  }
 0x104   :  { %1585 = vmatprep.subr.bf16.mxu1 %v2476_v33 }
 0x106   :  { %1545 = vmatpush2.bf16.msra.mxu0 %v2471_v34 }
 0x107   :  { %1586 = vmatpush2.bf16.msra.mxu1 %v2474_v35  ;;  %1546 = vmatprep.subr.bf16.mxu0 %v2479_v50  ;;  %v1664_v50 = vrot.slane %v1659_v30, %v1663_v25 }
 0x108   :  { %1587 = vmatprep.subr.bf16.mxu1 %v2482_v36 }
 0x10a   :  { %1547 = vmatpush2.bf16.msra.mxu0 %v2477_v39 }
 0x10b   :  { %1588 = vmatpush2.bf16.msra.mxu1 %v2480_v40  ;;  %2128 = vmatprep.subr.msk.bf16.mxu0 %vm1609_vm0, %v2127_v41  ;;  %v1668_v40 = vrot.slane %v1659_v30, %v1667_v32 }
 0x10c   :  { %2148 = vmatprep.subr.bf16.mxu1 %v2486_v48 }
 0x10d   :  { %1549 = vmatmul.mubr.bf16.vlgmr.msra.gmra.mxu0 %v155_v45 }
 0x10e   :  { %1590 = vmatmul.mubr.bf16.vlgmr.msra.gmra.mxu1 %v157_v43  ;;  %1631 = vmatpush1.bf16.msra.mxu0 %v1611_v46 }
 0x10f   :  { %1648 = vmatprep.mubr.bf16.mxu0 %v2667_v27  ;;  %2149 = vmatpush3.bf16.msra.mxu1 %v2487_v49  ;;  %v2493_v27 = vld [vmem:[#allocation12 + $0x20] sm:$0xff]  }
 0x110   :  { %2150 = vmatprep.subr.bf16.mxu1 %v2488_v38  ;;  %2172 = vmatprep.subr.bf16.mxu0 %v2668_v44 }
 0x113   :  { %2151 = vmatpush3.bf16.msra.mxu1 %v2489_v26 }
 0x114   :  { %2152 = vmatprep.subr.bf16.mxu1 %v2490_v51  ;;  %v1895_v51 = vld [vmem:[#allocation2] sm:$0x1] }
 0x115   :  { %2129 = vmatmul.mubr.msk.bf16.vlgmr.msra.gmra.mxu0 %vm1605_vm1, %v1598_v47  ;;  %1898 = vperm.xlu0 %2193, %v1895_v51  }
 0x116   :  { %2174 = vmatprep.mubr.msk.bf16.mxu0 %vm2669_vm2, %v2668_v44 }
 0x117   :  { %2153 = vmatpush3.bf16.msra.mxu1 %v2491_v52 }
 0x118   :  { %2154 = vmatprep.subr.bf16.mxu1 %v2492_v53  ;;  %v2130_v53 = vld [vmem:[%s2823_s8] ss:$0 sm:$0xff]  ;;  %s2670_s8 = smov [#allocation14]  }
 0x119   :  { %s1920_s13 = sshll.u32 %s2670_s8, 4  ;;  %s1921_s13 = int_to_ptr.vmem [resolvable:$true] %s1920_s13 }
 0x11a   :  { %s2630_s2 = scalar_lea.vmem %s1921_s13, 32  ;;  %p2631_p3 = scmp.lt.s32.totalorder %s1921_s13, %s1921_s13 }
 0x11b   :  { %2155 = vmatpush3.bf16.msra.mxu1 %v2493_v27 }
 0x11c   :  { %2156 = vmatprep.subr.bf16.mxu1 %v2494_v59 }
 0x11f   :  { %2157 = vmatpush3.bf16.msra.mxu1 %v2495_v61 }
 0x120   :  { %2158 = vmatprep.subr.bf16.mxu1 %v2496_v2 }
 0x123   :  { %2159 = vmatpush3.bf16.msra.mxu1 %v2497_v3 }
 0x124   :  { %2160 = vmatprep.subr.bf16.mxu1 %v2498_v4 }
 0x127   :  { %2161 = vmatpush3.bf16.msra.mxu1 %v2499_v5 }
 0x128   :  { %2162 = vmatprep.subr.bf16.mxu1 %v2500_v6 }
 0x12b   :  { %2163 = vmatpush3.bf16.msra.mxu1 %v2501_v7 }
 0x14d   :  { %v906_v54 = vpop.f32.mrf.mxu0 }
 0x14e   :  { %v947_v55 = vpop.f32.mrf.mxu1 }
 0x14f   :  { %v948_v56 = vadd.f32 %v947_v55, %v906_v54  ;;  %v908_v57 = vpop.f32.mrf.mxu0 }
 0x150   :  { %v949_v58 = vpop.f32.mrf.mxu1 }
 0x151   :  { %v950_v60 = vadd.f32 %v949_v58, %v908_v57  ;;  %v910_v62 = vpop.f32.mrf.mxu0 }
 0x152   :  { %v951_v63 = vpop.f32.mrf.mxu1 }
 0x153   :  { %v911_v0 = vpop.f32.mrf.mxu0 }
 0x154   :  { %v952_v1 = vpop.f32.mrf.mxu1 }
 0x18d   :  { %v988_v8 = vpop.f32.mrf.mxu0 }
 0x18e   :  { %v1509_v9 = vpop.f32.mrf.mxu1  ;;  %v989_v10 = vadd.f32 %v988_v8, %v948_v56 }
 0x18f   :  { %v990_v11 = vpop.f32.mrf.mxu0 }
 0x190   :  { %v1511_v12 = vpop.f32.mrf.mxu1  ;;  %v1510_v13 = vadd.f32 %v1509_v9, %v989_v10  ;;  %v991_v14 = vadd.f32 %v990_v11, %v950_v60  ;;  %v1853_v60 = vld [vmem:[%s2824_s9] sm:$0xf]  ;;  %v1899_v61 = vpop.permute.xlu0 %1898  ;;  %s2626_s9 = scalar_lea.vmem %s1921_s13, 16 }
 0x191   :  { %v992_v15 = vpop.f32.mrf.mxu0  ;;  %v1904_v62 = vrot.slane %v1899_v61, %v1663_v25  ;;  %p2627_p2 = scmp.ne.s32.totalorder %s1921_s13, %s2626_s9  ;;  %p2632_p4 = scmp.lt.s32.totalorder %s2630_s2, %s2626_s9 }
 0x192   :  { %v1513_v16 = vpop.f32.mrf.mxu1  ;;  %v1512_v17 = vadd.f32 %v1511_v12, %v991_v14 }
 0x193   :  { %v993_v18 = vpop.f32.mrf.mxu0  ;;  %p2633_p5 = por %p2632_p4, %p2631_p3 }
 0x194   :  { %v1514_v19 = vpop.f32.mrf.mxu1 }
 0x195   :  { %p2634_p6 = pnand %p2633_p5, %p2627_p2 }
 0x1cd   :  { %v1550_v20 = vpop.f32.mrf.mxu0 }
 0x1ce   :  { %v1591_v21 = vpop.f32.mrf.mxu1  ;;  %v1551_v24 = vadd.f32 %v1550_v20, %v1510_v13 }
 0x1cf   :  { %v1552_v22 = vpop.f32.mrf.mxu0 }
 0x1d0   :  { %v1593_v23 = vpop.f32.mrf.mxu1  ;;  %v1553_v31 = vadd.f32 %v1552_v22, %v1512_v17  ;;  %v1592_v35 = vadd.f32 %v1591_v21, %v1551_v24 }
 0x1d1   :  { %v1554_v28 = vpop.f32.mrf.mxu0 }
 0x1d2   :  { %v1595_v29 = vpop.f32.mrf.mxu1  ;;  %v1594_v37 = vadd.f32 %v1593_v23, %v1553_v31 }
 0x1d3   :  { %v1555_v33 = vpop.f32.mrf.mxu0 }
 0x1d4   :  { %v1596_v34 = vpop.f32.mrf.mxu1 }
 0x1d5   :  { %v1650_v36 = vpop.f32.mrf.mxu0 }
 0x1d6   :  { %v1657_v39 = vadd.f32 %v1650_v36, %v1592_v35 }
 0x1d7   :  { %v1652_v41 = vpop.f32.mrf.mxu0 }
 0x1d8   :  { %v1671_v42 = vadd.f32 %v1664_v50, %v1657_v39  ;;  %v1658_v43 = vadd.f32 %v1652_v41, %v1594_v37 }
 0x1d9   :  { %v1654_v45 = vpop.f32.mrf.mxu0 }
 0x1da   :  { %v1672_v46 = vadd.f32 %v1668_v40, %v1658_v43  ;;  %v1673_v47 = vmax.f32 %v1671_v42, 0.0 }
 0x1db   :  { %v1655_v48 = vpop.f32.mrf.mxu0 }
 0x1dc   :  { %v1674_v49 = vmax.f32 %v1672_v46, 0.0  ;;  %v1675_v26 = vpack.c.bf16 %v1673_v47, %v1673_v47 }
 0x1de   :  { %v1676_v38 = vpack.c.bf16 %v1674_v49, %v1674_v49 }
 0x1e0   :  { %1844 = vmatprep.mubr.bf16.mxu1 %v1676_v38 }
 0x1e1   :  { %1845 = vmatmul.mubr.bf16.vlgmr.msra.gmra.mxu1 %v1675_v26 }
 0x2a1   :  { %v2164_v52 = vpop.f32.mrf.mxu1 }
 0x2a3   :  { %v2165_v27 = vpop.f32.mrf.mxu1 }
 0x2a4   :  { %v2166_v54 = vadd.f32 %v2165_v27, %v2164_v52 }
 0x2a5   :  { %v2167_v55 = vpop.f32.mrf.mxu1 }
 0x2a6   :  { %v1847_v56 = vadd.f32 %v2166_v54, %v2130_v53 }
 0x2a7   :  { %v2168_v57 = vpop.f32.mrf.mxu1 }
 0x2a8   :  { %v1852_v58 = vmax.f32 %v1847_v56, 0.0 }
 0x2aa   :  { %v1854_v59 = vpack.c.bf16 %v1852_v58, %v1852_v58 }
 0x2ac   :  { %2173 = vmatpush3.bf16.xpose.msra.mxu0 %v1854_v59 }
 0x2b3   :  { %2175 = vmatmul.mubr.bf16.vlgmr.msra.gmra.mxu0 %v1853_v60 }
 0x373   :  { %v1889_v63 = vpop.f32.mrf.mxu0 }
 0x374   :  { %v1905_v0 = vadd.f32 %v1904_v62, %v1889_v63 }
 0x375   :  { %v2176_v1 = vpop.f32.mrf.mxu0 }
 0x376   :  { %v2147_v2 = vmul.f32 -1.442695, %v1905_v0 }
 0x377   :  { %v1892_v3 = vpop.f32.mrf.mxu0 }
 0x378   :  { %2502 = vpow2.f32 %v2147_v2 }
 0x379   :  { %v2177_v4 = vpop.f32.mrf.mxu0 }
 0x385   :  { %v2503_v5 = vpop.eup %2502 }
 0x386   :  { %v1909_v6 = vadd.f32 1.0, %v2503_v5 }
 0x388   :  { %2504 = vrcp.f32 %v1909_v6 }
 0x395   :  { %v2505_v7 = vpop.eup %2504 }
 0x396   :  { %1913 = vst.msk [vmem:[#allocation14] sm:$0x1] %vm1912_vm3, %v2505_v7 }
 0x397   :  { %2637 = shalt.err (!%p2634_p6)
}
 0x398   :  { %1923 = dma.vmem_to_hbm [thread:$0]  %s1921_s13, 16, %s2826_s11, [#allocation5]  }
 0x399   :  { %2654 = dma.done.wait [#allocation5], 16  }
 0x39a   :  { %2655 = vsyncadd [#allocation5], 4294967280 }
 0x39b   :  { %1927 = vsyncpa [#allocation4], 1 }
 0x39c   :  { %1928 = vsyncpa [#allocation7], 1 }
 0x39d   :  { %1929 = vsyncpa [#allocation10], 1 }
 0x39e   :  { %1930 = vsyncpa [#allocation13], 1 }
 0x39f   :  { %1931 = vsyncpa [#allocation5], 1 }

</bundles_post_ra>
